<compile_context>
chip_gen: v6e
topology: v6e:2x2x1
jax: 0.10.0
libtpu: 0.0.40
codegen_flags: <defaults>
</compile_context>

<pallas_src>
import functools

import jax
import jax.numpy as jnp
from jax.experimental import pallas as pl
from jax.experimental.pallas import tpu as pltpu

EPS = 1e-8  # matches the reference module's default eps


def _rmsnorm_kernel(x_ref, o_ref, *, inv_hidden):
    # x_ref / o_ref: (row_tile, hidden) in VMEM.
    x = x_ref[...].astype(jnp.float32)
    # sum * (1/hidden) with a compile-time-constant reciprocal (VPU mul);
    # rsqrt goes to the EUP slot.
    ms = jnp.sum(x * x, axis=-1, keepdims=True) * inv_hidden
    inv_rms = jax.lax.rsqrt(ms + EPS)
    # Re-index x_ref for the scaled output so the f32 copy of the whole tile
    # does not have to stay live across both the reduction and the scale.
    o_ref[...] = (x_ref[...].astype(jnp.float32) * inv_rms).astype(o_ref.dtype)


def _tpu_vmem_and_cores():
    """Per-core VMEM capacity (bytes) and TensorCore count, with safe fallbacks."""
    vmem = 64 << 20   # v7x per-TC value: safe lower bound everywhere
    cores = 2         # assume up to 2 TCs (v7x); harmless on single-TC chips
    try:
        info = pltpu.get_tpu_info()
        v = getattr(info, "vmem_capacity_bytes", None)
        if isinstance(v, int) and v > 0:
            vmem = v
        for name in ("num_tensorcores", "tensorcores_per_chip", "num_cores",
                     "cores_per_chip"):
            c = getattr(info, name, None)
            if isinstance(c, int) and c > 0:
                cores = c
                break
    except Exception:
        pass
    return vmem, cores


def _pick_row_tile(rows, hidden, dtype, vmem_budget_bytes, target_steps):
    itemsize = jnp.dtype(dtype).itemsize
    # Sublane packing: 8 for f32, 16 for bf16/f16, 32 for 8-bit types.
    pack = max(8, 32 // itemsize)

    # Per-row VMEM cost of a block:
    #   * in + out blocks, double-buffered by the pipeline, at the input dtype
    #     -> 2 * 2 * itemsize
    #   * ~one live f32 copy of the tile inside the kernel (exists once, not
    #     per pipeline stage) -> 4 bytes
    per_row = hidden * (4 * itemsize + 4)
    rt = max(pack, vmem_budget_bytes // per_row)

    # On big-enough problems keep ~target_steps grid steps so BlockSpec
    # double-buffering overlaps DMA with compute, and so the parallel row axis
    # can shard across both TensorCores on v7x.  Tiny problems stay one block
    # (no pointless per-step overhead on single-TC chips).
    in_bytes = rows * hidden * itemsize
    if in_bytes >= (4 << 20) and rows >= target_steps * pack:
        rt = min(rt, pl.cdiv(pl.cdiv(rows, target_steps), pack) * pack)

    # Never taller than the (pack-rounded) row count.
    rt = min(rt, pl.cdiv(rows, pack) * pack)
    rt = max(pack, (int(rt) // pack) * pack)
    return int(rt)


def rmsnorm(x):
    """RMSNorm over the last axis of x (any leading dims), no learnable scale."""
    orig_shape = x.shape
    hidden = orig_shape[-1]
    x2d = x.reshape(-1, hidden)
    rows = x2d.shape[0]

    vmem_capacity, num_cores = _tpu_vmem_and_cores()
    # Leave ~25% headroom for compiler scratch / semaphores / misc.
    vmem_budget = int(vmem_capacity * 3 // 4)
    target_steps = max(4, 2 * num_cores)

    row_tile = _pick_row_tile(rows, hidden, x.dtype, vmem_budget, target_steps)
    grid = (pl.cdiv(rows, row_tile),)

    itemsize = jnp.dtype(x.dtype).itemsize
    # Double-buffered in+out at the input dtype + one f32 tile temporary,
    # plus headroom; never request more than physical VMEM.
    needed = row_tile * hidden * (4 * itemsize + 4) + (4 << 20)
    vmem_limit = int(min(max(needed, 16 << 20), vmem_capacity))

    kernel = functools.partial(_rmsnorm_kernel, inv_hidden=1.0 / float(hidden))

    # NOTE: if hidden < 128 (as in the small __main__ test), the lane axis is
    # under-filled and stores are masked; production hidden sizes (multiples
    # of 128) hit the lane-dense fast path.
    out = pl.pallas_call(
        kernel,
        out_shape=jax.ShapeDtypeStruct((rows, hidden), x.dtype),
        grid_spec=pltpu.PrefetchScalarGridSpec(
            num_scalar_prefetch=0,
            grid=grid,
            in_specs=[pl.BlockSpec((row_tile, hidden), lambda i: (i, 0))],
            out_specs=pl.BlockSpec((row_tile, hidden), lambda i: (i, 0)),
        ),
        compiler_params=pltpu.CompilerParams(
            dimension_semantics=("parallel",),
            vmem_limit_bytes=vmem_limit,
        ),
    )(x2d)

    return out.reshape(orig_shape)


def rmsnorm_ref(x):
    xf = x.astype(jnp.float32)
    ms = jnp.mean(xf * xf, axis=-1, keepdims=True)
    return (xf * jax.lax.rsqrt(ms + EPS)).astype(x.dtype)


if __name__ == "__main__":
    key = jax.random.PRNGKey(0)
    # batch=2, seq=8, hidden=32  (normalize over hidden, as in the module)
    x = jax.random.normal(key, (2, 8, 32), dtype=jnp.float32)

    y = rmsnorm(x)
    jax.block_until_ready(y)

    y_ref = rmsnorm_ref(x)
    assert y.shape == x.shape and y.dtype == x.dtype
    assert jnp.allclose(y, y_ref, atol=1e-5, rtol=1e-5)

    # Also exercise a ragged row count (rows not a multiple of the sublane
    # pack) and a bf16 input to cover the no-padding grid path and packing.
    x2 = jax.random.normal(jax.random.PRNGKey(1), (3, 5, 256), dtype=jnp.bfloat16)
    y2 = rmsnorm(x2)
    jax.block_until_ready(y2)
    assert jnp.allclose(
        y2.astype(jnp.float32), rmsnorm_ref(x2).astype(jnp.float32),
        atol=2e-2, rtol=2e-2,
    )

    print("KERNEL_OK")
</pallas_src>

<mosaic_0001>
module attributes {stable_mosaic.version = 11 : i64} {
  func.func @_rmsnorm_kernel(%arg0: i32, %arg1: memref<16x32xf32, #tpu.memory_space<vmem>>, %arg2: memref<16x32xf32, #tpu.memory_space<vmem>>) attributes {dimension_semantics = [#tpu.dimension_semantics<parallel>], iteration_bounds = array<i64: 1>, scalar_prefetch = 0 : i64, scratch_operands = 0 : i64, tpu.core_type = #tpu.core_type<tc>, window_params = [{transform_indices = @transform_0, window_bounds = array<i64: 16, 32>}, {transform_indices = @transform_1, window_bounds = array<i64: 16, 32>}]} {
    %c0 = arith.constant 0 : index
    %c0_0 = arith.constant 0 : index
    %0 = vector.load %arg1[%c0, %c0_0] : memref<16x32xf32, #tpu.memory_space<vmem>>, vector<16x32xf32>
    %1 = arith.mulf %0, %0 : vector<16x32xf32>
    %cst = arith.constant dense<0.000000e+00> : vector<16xf32>
    %2 = vector.multi_reduction <add>, %1, %cst [1] : vector<16x32xf32> to vector<16xf32>
    %3 = vector.shape_cast %2 : vector<16xf32> to vector<16x1xf32>
    %cst_1 = arith.constant 3.125000e-02 : f32
    %4 = vector.broadcast %cst_1 : f32 to vector<16x1xf32>
    %5 = arith.mulf %3, %4 : vector<16x1xf32>
    %cst_2 = arith.constant 9.99999993E-9 : f32
    %6 = vector.broadcast %cst_2 : f32 to vector<16x1xf32>
    %7 = arith.addf %5, %6 : vector<16x1xf32>
    %8 = math.rsqrt %7 : vector<16x1xf32>
    %c0_3 = arith.constant 0 : index
    %c0_4 = arith.constant 0 : index
    %9 = vector.load %arg1[%c0_3, %c0_4] : memref<16x32xf32, #tpu.memory_space<vmem>>, vector<16x32xf32>
    %10 = vector.broadcast %8 : vector<16x1xf32> to vector<16x32xf32>
    %11 = arith.mulf %9, %10 : vector<16x32xf32>
    %c0_5 = arith.constant 0 : index
    %c0_6 = arith.constant 0 : index
    %12 = vector.load %arg2[%c0_5, %c0_6] : memref<16x32xf32, #tpu.memory_space<vmem>>, vector<16x32xf32>
    tpu.vector_store %arg2[%c0_5, %c0_6], %11 {strides = array<i32>} : memref<16x32xf32, #tpu.memory_space<vmem>>, vector<16x32xf32>,
    return
  }
  func.func @transform_0(%arg0: i32) -> (i32, i32) {
    %c0_i32 = arith.constant 0 : i32
    %c0_i32_0 = arith.constant 0 : i32
    return %arg0, %c0_i32 : i32, i32
  }
  func.func @transform_1(%arg0: i32) -> (i32, i32) {
    %c0_i32 = arith.constant 0 : i32
    %c0_i32_0 = arith.constant 0 : i32
    return %arg0, %c0_i32 : i32, i32
  }
}

</mosaic_0001>

<bundles_post_ra>
// kernel: tpu_custom_call.1
= control target key start
LH: loop header
LB: loop body
LE: loop exit
PB: predicated region body
PF: predicated region fallthrough
CT: control target
= control target key end

     0   :  { %6 = vsyncpa [#allocation3], 0  ;;  %s143_s0 = inlined_call_operand.hbm [shape: f32[16,32], index: 0, kind: input, shape index: {}]   ;;  %s144_s1 = inlined_call_operand.hbm [shape: f32[16,32], index: 1, kind: output, shape index: {}]  }
   0x1   :  { %7 = vsyncpa [#allocation4], 0  ;;  %s113_s6 = smov [#allocation2]  }
   0x2   :  { %s13_s7 = sshll.u32 %s113_s6, 4  ;;  %s14_s7 = int_to_ptr.vmem [resolvable:$true] %s13_s7 }
   0x3   :  { %s77_s8 = scalar_lea.vmem %s14_s7, 256  ;;  %p82_p1 = scmp.lt.s32.totalorder %s14_s7, %s14_s7 }
   0x4   :  { %p78_p0 = scmp.ne.s32.totalorder %s14_s7, %s77_s8  ;;  %p83_p2 = scmp.lt.s32.totalorder %s77_s8, %s77_s8 }
   0x6   :  { %p84_p3 = por %p83_p2, %p82_p1 }
   0x8   :  { %p85_p4 = pnand %p84_p3, %p78_p0 }
   0xa   :  { %88 = shalt.err (!%p85_p4)
}
   0xb   :  { %s114_s9 = smov 128   ;;  %s115_s10 = smov 8  }
   0xc   :  { %19 = dma.hbm_to_vmem [thread:$0]  %s143_s0, 256, %s14_s7, [#allocation3], %s114_s9, %s114_s9, %s115_s10  }
   0xd   :  { %109 = dma.done.wait [#allocation3], 256  }
   0xe   :  { %110 = vsyncadd [#allocation3], 4294967040  ;;  %v23_v0 = vld [vmem:[#allocation2] sm:$0xff]  ;;  %vm27_vm0 = vcmask 261120   ;;  %v24_v1 = vld [vmem:[#allocation2 + $0x8] sm:$0xff]  ;;  %s116_s0 = smov [#allocation5]  }
   0xf   :  { %v25_v2 = vmul.f32 %v23_v0, %v23_v0  ;;  %v26_v3 = vmul.f32 %v24_v1, %v24_v1  ;;  %s49_s13 = sshll.u32 %s116_s0, 4  ;;  %s50_s13 = int_to_ptr.vmem [resolvable:$true] %s49_s13 }
  0x10   :  { %s89_s14 = scalar_lea.vmem %s50_s13, 256  ;;  %p94_p6 = scmp.lt.s32.totalorder %s50_s13, %s50_s13 }
  0x11   :  { %v28_v4 = vsel %vm27_vm0, %v25_v2, 0.0  ;;  %v31_v5 = vsel %vm27_vm0, %v26_v3, 0.0  ;;  %p90_p5 = scmp.ne.s32.totalorder %s50_s13, %s89_s14  ;;  %p95_p7 = scmp.lt.s32.totalorder %s89_s14, %s89_s14 }
  0x12   :  { %29 = vadd.xlane.f32.xlu0 %v28_v4 }
  0x13   :  { %p96_p8 = por %p95_p7, %p94_p6 }
  0x15   :  { %p97_p9 = pnand %p96_p8, %p90_p5 }
  0x16   :  { %32 = vadd.xlane.f32.xlu0 %v31_v5 }
  0x9b   :  { %v30_v6 = vpop.xlane.xlu0 %29 }
  0x9c   :  { %v34_v7 = vmul.f32 0.03125, %v30_v6 }
  0x9e   :  { %v36_v8 = vadd.f32 1e-08, %v34_v7 }
  0x9f   :  { %v33_v9 = vpop.xlane.xlu0 %32 }
  0xa0   :  { %65 = vrsqrt.f32 %v36_v8  ;;  %v35_v10 = vmul.f32 0.03125, %v33_v9 }
  0xa2   :  { %v37_v11 = vadd.f32 1e-08, %v35_v10 }
  0xa4   :  { %67 = vrsqrt.f32 %v37_v11 }
  0xad   :  { %v66_v12 = vpop.eup %65 }
  0xae   :  { %v40_v13 = vmul.f32 %v66_v12, %v23_v0 }
  0xb0   :  { %42 = vst.msk [vmem:[#allocation5] sm:$0xff] %vm27_vm0, %v40_v13 }
  0xb1   :  { %v68_v14 = vpop.eup %67 }
  0xb2   :  { %v41_v15 = vmul.f32 %v68_v14, %v24_v1 }
  0xb4   :  { %43 = vst.msk [vmem:[#allocation5 + $0x8] sm:$0xff] %vm27_vm0, %v41_v15 }
  0xb5   :  { %100 = shalt.err (!%p97_p9)
}
  0xb6   :  { %55 = dma.vmem_to_hbm [thread:$0]  %s50_s13, 256, %s144_s1, [#allocation4], %s114_s9, %s114_s9, %s115_s10  }
  0xb7   :  { %111 = dma.done.wait [#allocation4], 256  }
  0xb8   :  { %112 = vsyncadd [#allocation4], 4294967040 }
  0xb9   :  { %59 = vsyncpa [#allocation3], 1 }
  0xba   :  { %60 = vsyncpa [#allocation4], 1 }

</bundles_post_ra>
